<compile_context>
chip_gen: v6e
topology: v6e:2x2x1
jax: 0.10.0
libtpu: 0.0.40
codegen_flags: <defaults>
</compile_context>

<pallas_src>
import jax
import jax.numpy as jnp
from jax.experimental import pallas as pl
from jax.experimental.pallas import tpu as pltpu

EPS = 1e-5
# nn.LeakyReLU(True): the first positional arg is negative_slope, so True
# coerces to 1.0 -> the activation is mathematically the identity. We keep the
# generic code path; it is elided at trace time when the slope is exactly 1.0.
# TODO(synk): if the original author intended inplace=True, set NEG_SLOPE=0.01.
NEG_SLOPE = 1.0
SUBLANES = 8


def _bn_act(h, gamma, beta):
    """BatchNorm1d (training mode, biased var) with folded affine + LeakyReLU.

    Variance as E[h^2] - E[h]^2: the two sublane reductions are independent
    instead of a serialized reduce -> broadcast -> subtract -> square -> reduce
    chain. Row math on (1, h) is cheap; only 2 [B,h]-wide VALU ops remain.
    """
    inv_n = 1.0 / h.shape[0]
    s = jnp.sum(h, axis=0, keepdims=True)
    s2 = jnp.sum(h * h, axis=0, keepdims=True)
    mean = s * inv_n
    var = s2 * inv_n - mean * mean
    scale = gamma * jax.lax.rsqrt(var + EPS)      # EUP rsqrt (free-ish slot)
    shift = beta - mean * scale
    hn = h * scale + shift
    if NEG_SLOPE != 1.0:                          # identity when slope == 1.0
        hn = jnp.where(hn >= 0, hn, NEG_SLOPE * hn)
    return hn


def _make_kernel(h1, h2, out_dim):
    def kernel(x_ref, w1_ref, w2_ref, w3_ref, p_ref, o_ref):
        xv = x_ref[...]
        p = p_ref[...]
        g1_r, be1_r = p[0:1, :h1], p[1:2, :h1]
        g2_r, be2_r = p[2:3, :h2], p[3:4, :h2]
        b3_r = p[4:5, :out_dim]

        # layer1: Linear (bias folded away by BN mean-sub) -> BN -> LeakyReLU
        a1 = jnp.dot(xv, w1_ref[...], preferred_element_type=jnp.float32)
        a1 = _bn_act(a1, g1_r, be1_r)
        # layer2
        a2 = jnp.dot(a1, w2_ref[...], preferred_element_type=jnp.float32)
        a2 = _bn_act(a2, g2_r, be2_r)
        # layer3: Linear + bias, written straight to the (B, out_dim) output
        o_ref[...] = (
            jnp.dot(a2, w3_ref[...], preferred_element_type=jnp.float32) + b3_r
        )

    return kernel


def prepare_params(params):
    """One-time packing of parameters into kernel-ready arrays (init time).

    * b1/b2 dropped (cancelled by training-mode batch-mean subtraction).
    * The five tiny per-feature rows (g1, be1, g2, be2, b3) are packed into a
      single (8, P) f32 tile -> one small DMA instead of five.
    * No lane-padding of weights: Mosaic handles K/N < 128 with masked
      layouts; weight DMA stays at its raw size.
    """
    (w1, b1, g1, be1, w2, b2, g2, be2, w3, b3) = params
    del b1, b2  # cancelled exactly by the BatchNorm mean subtraction

    h1 = w1.shape[1]
    h2 = w2.shape[1]
    out_dim = w3.shape[1]
    P = max(h1, h2, out_dim)

    f32 = jnp.float32
    pp = jnp.zeros((SUBLANES, P), f32)
    pp = pp.at[0, :h1].set(g1.reshape(-1).astype(f32))
    pp = pp.at[1, :h1].set(be1.reshape(-1).astype(f32))
    pp = pp.at[2, :h2].set(g2.reshape(-1).astype(f32))
    pp = pp.at[3, :h2].set(be2.reshape(-1).astype(f32))
    pp = pp.at[4, :out_dim].set(b3.reshape(-1).astype(f32))

    return (w1.astype(f32), w2.astype(f32), w3.astype(f32), pp)


@jax.jit
def batch_net_cls(x, kernel_params):
    """Fused forward pass. `kernel_params` comes from prepare_params()."""
    w1, w2, w3, pp = kernel_params
    x = x.astype(jnp.float32)

    B, in_dim = x.shape
    h1 = w1.shape[1]
    h2 = w2.shape[1]
    out_dim = w3.shape[1]

    flops = 2 * B * (in_dim * h1 + h1 * h2 + h2 * out_dim) + 10 * B * (h1 + h2)
    bytes_accessed = 4 * (x.size + w1.size + w2.size + w3.size + pp.size
                          + B * out_dim)

    vmem = pl.BlockSpec(memory_space=pltpu.MemorySpace.VMEM)
    return pl.pallas_call(
        _make_kernel(h1, h2, out_dim),
        out_shape=jax.ShapeDtypeStruct((B, out_dim), jnp.float32),
        in_specs=[vmem] * 5,
        out_specs=vmem,
        cost_estimate=pl.CostEstimate(
            flops=flops,
            transcendentals=h1 + h2,         # one rsqrt per BN feature
            bytes_accessed=bytes_accessed),
    )(x, w1, w2, w3, pp)


def init_params(key, in_dim, h1, h2, out_dim):
    ks = jax.random.split(key, 6)
    # weights stored as [in, out] (transpose of PyTorch nn.Linear layout)
    w1 = jax.random.normal(ks[0], (in_dim, h1), jnp.float32) * 0.1
    b1 = jax.random.normal(ks[1], (1, h1), jnp.float32) * 0.1
    w2 = jax.random.normal(ks[2], (h1, h2), jnp.float32) * 0.1
    b2 = jax.random.normal(ks[3], (1, h2), jnp.float32) * 0.1
    w3 = jax.random.normal(ks[4], (h2, out_dim), jnp.float32) * 0.1
    b3 = jax.random.normal(ks[5], (1, out_dim), jnp.float32) * 0.1
    # BatchNorm affine params (PyTorch default init: gamma=1, beta=0)
    g1 = jnp.ones((1, h1), jnp.float32)
    be1 = jnp.zeros((1, h1), jnp.float32)
    g2 = jnp.ones((1, h2), jnp.float32)
    be2 = jnp.zeros((1, h2), jnp.float32)
    return (w1, b1, g1, be1, w2, b2, g2, be2, w3, b3)


def reference(x, params):
    # Pure-JAX reference that mirrors the PyTorch module literally,
    # *including* the pre-BN linear biases the kernel folds away.
    (w1, b1, g1, be1, w2, b2, g2, be2, w3, b3) = params

    def bn_leaky(h, g, be):
        m = jnp.mean(h, axis=0, keepdims=True)
        v = jnp.mean((h - m) ** 2, axis=0, keepdims=True)
        hn = (h - m) / jnp.sqrt(v + EPS) * g + be
        return jnp.where(hn >= 0, hn, NEG_SLOPE * hn)

    h = bn_leaky(x @ w1 + b1, g1, be1)
    h = bn_leaky(h @ w2 + b2, g2, be2)
    return h @ w3 + b3


if __name__ == "__main__":
    key = jax.random.PRNGKey(0)
    k_x, k_p = jax.random.split(key)

    batch, in_dim, n_hidden_1, n_hidden_2, out_dim = 8, 16, 32, 32, 8
    x = jax.random.normal(k_x, (batch, in_dim), jnp.float32)
    params = init_params(k_p, in_dim, n_hidden_1, n_hidden_2, out_dim)

    # One-time parameter packing (kept OUT of the per-call hot path).
    kernel_params = jax.tree_util.tree_map(
        jax.block_until_ready, prepare_params(params))

    out = batch_net_cls(x, kernel_params)
    out = jax.block_until_ready(out)

    ref = reference(x, params)
    assert out.shape == (batch, out_dim)
    assert jnp.allclose(out, ref, atol=1e-4, rtol=1e-4), \
        float(jnp.max(jnp.abs(out - ref)))

    print("KERNEL_OK")
</pallas_src>

<mosaic_0001>
module attributes {stable_mosaic.version = 11 : i64} {
  func.func @kernel(%arg0: memref<8x16xf32, #tpu.memory_space<vmem>>, %arg1: memref<16x32xf32, #tpu.memory_space<vmem>>, %arg2: memref<32x32xf32, #tpu.memory_space<vmem>>, %arg3: memref<32x8xf32, #tpu.memory_space<vmem>>, %arg4: memref<8x32xf32, #tpu.memory_space<vmem>>, %arg5: memref<8x8xf32, #tpu.memory_space<vmem>>) attributes {dimension_semantics = [], scalar_prefetch = 0 : i64, scratch_operands = 0 : i64, tpu.core_type = #tpu.core_type<tc>} {
    %c0 = arith.constant 0 : index
    %c0_0 = arith.constant 0 : index
    %0 = vector.load %arg0[%c0, %c0_0] : memref<8x16xf32, #tpu.memory_space<vmem>>, vector<8x16xf32>
    %c0_1 = arith.constant 0 : index
    %c0_2 = arith.constant 0 : index
    %1 = vector.load %arg4[%c0_1, %c0_2] : memref<8x32xf32, #tpu.memory_space<vmem>>, vector<8x32xf32>
    %2 = vector.extract_strided_slice %1 {offsets = [0, 0], sizes = [1, 32], strides = [1, 1]} : vector<8x32xf32> to vector<1x32xf32>
    %3 = vector.extract_strided_slice %1 {offsets = [1, 0], sizes = [1, 32], strides = [1, 1]} : vector<8x32xf32> to vector<1x32xf32>
    %4 = vector.extract_strided_slice %1 {offsets = [2, 0], sizes = [1, 32], strides = [1, 1]} : vector<8x32xf32> to vector<1x32xf32>
    %5 = vector.extract_strided_slice %1 {offsets = [3, 0], sizes = [1, 32], strides = [1, 1]} : vector<8x32xf32> to vector<1x32xf32>
    %6 = vector.extract_strided_slice %1 {offsets = [4, 0], sizes = [1, 8], strides = [1, 1]} : vector<8x32xf32> to vector<1x8xf32>
    %c0_3 = arith.constant 0 : index
    %c0_4 = arith.constant 0 : index
    %7 = vector.load %arg1[%c0_3, %c0_4] : memref<16x32xf32, #tpu.memory_space<vmem>>, vector<16x32xf32>
    %cst = arith.constant dense<0.000000e+00> : vector<8x32xf32>
    %8 = tpu.matmul %0, %7, %cst {dimension_numbers = #tpu.dot_dimension_numbers<[1], [0], [0], [1], [0, 0, 1, 1], [], []>} : vector<8x16xf32>, vector<16x32xf32>, vector<8x32xf32> -> vector<8x32xf32>
    %cst_5 = arith.constant dense<0.000000e+00> : vector<32xf32>
    %9 = vector.multi_reduction <add>, %8, %cst_5 [0] : vector<8x32xf32> to vector<32xf32>
    %10 = vector.shape_cast %9 : vector<32xf32> to vector<1x32xf32>
    %11 = arith.mulf %8, %8 : vector<8x32xf32>
    %cst_6 = arith.constant dense<0.000000e+00> : vector<32xf32>
    %12 = vector.multi_reduction <add>, %11, %cst_6 [0] : vector<8x32xf32> to vector<32xf32>
    %13 = vector.shape_cast %12 : vector<32xf32> to vector<1x32xf32>
    %cst_7 = arith.constant 1.250000e-01 : f32
    %14 = vector.broadcast %cst_7 : f32 to vector<1x32xf32>
    %15 = arith.mulf %10, %14 : vector<1x32xf32>
    %cst_8 = arith.constant 1.250000e-01 : f32
    %16 = vector.broadcast %cst_8 : f32 to vector<1x32xf32>
    %17 = arith.mulf %13, %16 : vector<1x32xf32>
    %18 = arith.mulf %15, %15 : vector<1x32xf32>
    %19 = arith.subf %17, %18 : vector<1x32xf32>
    %cst_9 = arith.constant 9.99999974E-6 : f32
    %20 = vector.broadcast %cst_9 : f32 to vector<1x32xf32>
    %21 = arith.addf %19, %20 : vector<1x32xf32>
    %22 = math.rsqrt %21 : vector<1x32xf32>
    %23 = arith.mulf %2, %22 : vector<1x32xf32>
    %24 = arith.mulf %15, %23 : vector<1x32xf32>
    %25 = arith.subf %3, %24 : vector<1x32xf32>
    %26 = vector.broadcast %23 : vector<1x32xf32> to vector<8x32xf32>
    %27 = arith.mulf %8, %26 : vector<8x32xf32>
    %28 = vector.broadcast %25 : vector<1x32xf32> to vector<8x32xf32>
    %29 = arith.addf %27, %28 : vector<8x32xf32>
    %c0_10 = arith.constant 0 : index
    %c0_11 = arith.constant 0 : index
    %30 = vector.load %arg2[%c0_10, %c0_11] : memref<32x32xf32, #tpu.memory_space<vmem>>, vector<32x32xf32>
    %cst_12 = arith.constant dense<0.000000e+00> : vector<8x32xf32>
    %31 = tpu.matmul %29, %30, %cst_12 {dimension_numbers = #tpu.dot_dimension_numbers<[1], [0], [0], [1], [0, 0, 1, 1], [], []>} : vector<8x32xf32>, vector<32x32xf32>, vector<8x32xf32> -> vector<8x32xf32>
    %cst_13 = arith.constant dense<0.000000e+00> : vector<32xf32>
    %32 = vector.multi_reduction <add>, %31, %cst_13 [0] : vector<8x32xf32> to vector<32xf32>
    %33 = vector.shape_cast %32 : vector<32xf32> to vector<1x32xf32>
    %34 = arith.mulf %31, %31 : vector<8x32xf32>
    %cst_14 = arith.constant dense<0.000000e+00> : vector<32xf32>
    %35 = vector.multi_reduction <add>, %34, %cst_14 [0] : vector<8x32xf32> to vector<32xf32>
    %36 = vector.shape_cast %35 : vector<32xf32> to vector<1x32xf32>
    %cst_15 = arith.constant 1.250000e-01 : f32
    %37 = vector.broadcast %cst_15 : f32 to vector<1x32xf32>
    %38 = arith.mulf %33, %37 : vector<1x32xf32>
    %cst_16 = arith.constant 1.250000e-01 : f32
    %39 = vector.broadcast %cst_16 : f32 to vector<1x32xf32>
    %40 = arith.mulf %36, %39 : vector<1x32xf32>
    %41 = arith.mulf %38, %38 : vector<1x32xf32>
    %42 = arith.subf %40, %41 : vector<1x32xf32>
    %cst_17 = arith.constant 9.99999974E-6 : f32
    %43 = vector.broadcast %cst_17 : f32 to vector<1x32xf32>
    %44 = arith.addf %42, %43 : vector<1x32xf32>
    %45 = math.rsqrt %44 : vector<1x32xf32>
    %46 = arith.mulf %4, %45 : vector<1x32xf32>
    %47 = arith.mulf %38, %46 : vector<1x32xf32>
    %48 = arith.subf %5, %47 : vector<1x32xf32>
    %49 = vector.broadcast %46 : vector<1x32xf32> to vector<8x32xf32>
    %50 = arith.mulf %31, %49 : vector<8x32xf32>
    %51 = vector.broadcast %48 : vector<1x32xf32> to vector<8x32xf32>
    %52 = arith.addf %50, %51 : vector<8x32xf32>
    %c0_18 = arith.constant 0 : index
    %c0_19 = arith.constant 0 : index
    %53 = vector.load %arg3[%c0_18, %c0_19] : memref<32x8xf32, #tpu.memory_space<vmem>>, vector<32x8xf32>
    %cst_20 = arith.constant dense<0.000000e+00> : vector<8x8xf32>
    %54 = tpu.matmul %52, %53, %cst_20 {dimension_numbers = #tpu.dot_dimension_numbers<[1], [0], [0], [1], [0, 0, 1, 1], [], []>} : vector<8x32xf32>, vector<32x8xf32>, vector<8x8xf32> -> vector<8x8xf32>
    %55 = vector.broadcast %6 : vector<1x8xf32> to vector<8x8xf32>
    %56 = arith.addf %54, %55 : vector<8x8xf32>
    %c0_21 = arith.constant 0 : index
    %c0_22 = arith.constant 0 : index
    %57 = vector.load %arg5[%c0_21, %c0_22] : memref<8x8xf32, #tpu.memory_space<vmem>>, vector<8x8xf32>
    tpu.vector_store %arg5[%c0_21, %c0_22], %56 {strides = array<i32>} : memref<8x8xf32, #tpu.memory_space<vmem>>, vector<8x8xf32>,
    return
  }
}

</mosaic_0001>

<bundles_post_ra>
// kernel: batch_net_cls.1
= control target key start
LH: loop header
LB: loop body
LE: loop exit
PB: predicated region body
PF: predicated region fallthrough
CT: control target
= control target key end

     0   :  { %10 = vsyncpa [#allocation3], 0  ;;  %s590_s0 = inlined_call_operand.vmem [shape: f32[8,16], index: 0, kind: input, shape index: {}]   ;;  %s591_s1 = inlined_call_operand.hbm [shape: f32[16,32], index: 1, kind: input, shape index: {}]   ;;  %s592_s2 = inlined_call_operand.vmem [shape: f32[32,32], index: 2, kind: input, shape index: {}]   ;;  %s593_s3 = inlined_call_operand.vmem [shape: f32[32,8], index: 3, kind: input, shape index: {}]   ;;  %s594_s4 = inlined_call_operand.hbm [shape: f32[8,32], index: 4, kind: input, shape index: {}]   ;;  %s595_s5 = inlined_call_operand.hbm [shape: f32[8,8], index: 5, kind: output, shape index: {}]  }
   0x1   :  { %11 = vsyncpa [#allocation6], 0 }
   0x2   :  { %12 = vsyncpa [#allocation4], 0  ;;  %s498_s18 = smov [#allocation2]  }
   0x3   :  { %s20_s19 = sshll.u32 %s498_s18, 4  ;;  %s21_s19 = int_to_ptr.vmem [resolvable:$true] %s20_s19 }
   0x4   :  { %s440_s20 = scalar_lea.vmem %s21_s19, 256  ;;  %p445_p1 = scmp.lt.s32.totalorder %s21_s19, %s21_s19 }
   0x5   :  { %p441_p0 = scmp.ne.s32.totalorder %s21_s19, %s440_s20  ;;  %p446_p2 = scmp.lt.s32.totalorder %s440_s20, %s440_s20 }
   0x7   :  { %p447_p3 = por %p446_p2, %p445_p1 }
   0x9   :  { %p448_p4 = pnand %p447_p3, %p441_p0 }
   0xb   :  { %451 = shalt.err (!%p448_p4)
}
   0xc   :  { %s499_s21 = smov 128   ;;  %s500_s22 = smov 8  }
   0xd   :  { %26 = dma.hbm_to_vmem [thread:$0]  %s591_s1, 256, %s21_s19, [#allocation3], %s499_s21, %s499_s21, %s500_s22  }
   0xe   :  { %s501_s25 = smov [#allocation5]  }
   0xf   :  { %s37_s26 = sshll.u32 %s501_s25, 4  ;;  %s38_s26 = int_to_ptr.vmem [resolvable:$true] %s37_s26 }
  0x10   :  { %s460_s27 = scalar_lea.vmem %s38_s26, 128  ;;  %p465_p6 = scmp.lt.s32.totalorder %s38_s26, %s38_s26 }
  0x11   :  { %p461_p5 = scmp.ne.s32.totalorder %s38_s26, %s460_s27  ;;  %p466_p7 = scmp.lt.s32.totalorder %s460_s27, %s460_s27 }
  0x13   :  { %p467_p8 = por %p466_p7, %p465_p6 }
  0x15   :  { %p468_p9 = pnand %p467_p8, %p461_p5 }
  0x17   :  { %471 = shalt.err (!%p468_p9)
}
  0x18   :  { %40 = dma.hbm_to_vmem [thread:$0]  %s594_s4, 128, %s38_s26, [#allocation6]  }
  0x19   :  { %492 = dma.done.wait [#allocation3], 256  }
  0x1a   :  { %493 = vsyncadd [#allocation3], 4294967040 }
  0x1b   :  { %494 = dma.done.wait [#allocation6], 128  }
  0x1c   :  { %495 = vsyncadd [#allocation6], 4294967168  ;;  %v502_v0 = vmov 0.0   ;;  %vm503_vm0 = vmmov 0   ;;  %v50_v1 = vld [vmem:[#allocation2 + $0x8] sm:$0xff]  ;;  %v49_v2 = vld [vmem:[#allocation2] sm:$0xff]  ;;  %v153_v30 = vlaneseq }
  0x1d   :  { %392 = vmatprep.subr.mxu0 %v502_v0  ;;  %396 = vmatprep.mubr.msk.f32.mxu0 %vm503_vm0, %v502_v0  ;;  %v47_v3 = vld [vmem:[%s590_s0] sm:$0xff]  ;;  %vm51_vm1 = vcmask 130048   ;;  %v166_v4 = vld [vmem:[%s592_s2 + $0x18] sm:$0xff]  ;;  %v165_v5 = vld [vmem:[%s592_s2 + $0x10] sm:$0xff]  ;;  %vm125_vm2 = vcmask 261120   ;;  %vm358_vm3 = vcmask 64512  }
  0x1e   :  { %399 = vmatprep.subr.mxu1 %v502_v0  ;;  %407 = vmatprep.mubr.msk.f32.mxu1 %vm503_vm0, %v502_v0  ;;  %v164_v6 = vld [vmem:[%s592_s2 + $0x8] sm:$0xff]  ;;  %v163_v7 = vld [vmem:[%s592_s2] sm:$0xff]  ;;  %v154_v31 = vshrl.u32 %v153_v30, 7  ;;  %v48_v32 = vld [vmem:[#allocation5] sm:$0xff] }
  0x1f   :  { %393 = vmatpush3.msra.mxu0 %v50_v1  ;;  %400 = vmatpush3.msra.mxu1 %v166_v4  ;;  %v280_v44 = vld [vmem:[%s593_s3 + $0x18] sm:$0xff]  ;;  %v279_v45 = vld [vmem:[%s593_s3 + $0x10] sm:$0xff]  ;;  %v278_v46 = vld [vmem:[%s593_s3 + $0x8] sm:$0xff] }
  0x20   :  { %394 = vmatprep.subr.mxu0 %v502_v0  ;;  %401 = vmatprep.subr.mxu1 %v502_v0  ;;  %v155_v35 = vsub.s32 0, %v154_v31  ;;  %v160_v39 = vsub.s32 1, %v154_v31  ;;  %v277_v47 = vld [vmem:[%s593_s3] sm:$0xff]  ;;  %s504_s3 = smov [#allocation7]  }
  0x21   :  { %395 = vmatpush3.msra.mxu0 %v49_v2  ;;  %402 = vmatpush3.msra.mxu1 %v165_v5  ;;  %s366_s19 = sshll.u32 %s504_s3, 4  ;;  %s367_s19 = int_to_ptr.vmem [resolvable:$true] %s366_s19 }
  0x22   :  { %397 = vmatmul.mubr.msk.f32.vlgmr.msra.gmra.mxu0 %vm51_vm1, %v47_v3  ;;  %410 = vmatprep.subr.mxu0 %v502_v0  ;;  %s472_s20 = scalar_lea.vmem %s367_s19, 128  ;;  %p477_p11 = scmp.lt.s32.totalorder %s367_s19, %s367_s19 }
  0x23   :  { %418 = vmatprep.mubr.msk.f32.mxu0 %vm503_vm0, %v502_v0  ;;  %403 = vmatprep.subr.mxu1 %v502_v0  ;;  %p473_p10 = scmp.ne.s32.totalorder %s367_s19, %s472_s20  ;;  %p478_p12 = scmp.lt.s32.totalorder %s472_s20, %s472_s20 }
  0x24   :  { %404 = vmatpush3.msra.mxu1 %v164_v6  ;;  %411 = vmatpush3.msra.mxu0 %v280_v44 }
  0x25   :  { %405 = vmatprep.subr.mxu1 %v502_v0  ;;  %412 = vmatprep.subr.mxu0 %v502_v0  ;;  %p479_p13 = por %p478_p12, %p477_p11 }
  0x26   :  { %406 = vmatpush3.msra.mxu1 %v163_v7  ;;  %413 = vmatpush3.msra.mxu0 %v279_v45 }
  0x27   :  { %414 = vmatprep.subr.mxu0 %v502_v0  ;;  %p480_p0 = pnand %p479_p13, %p473_p10 }
  0x28   :  { %415 = vmatpush3.msra.mxu0 %v278_v46 }
  0x29   :  { %416 = vmatprep.subr.mxu0 %v502_v0 }
  0x2a   :  { %417 = vmatpush3.msra.mxu0 %v277_v47 }
  0xe2   :  { %v121_v8 = vpop.f32.mrf.mxu0 }
  0xe3   :  { %v126_v9 = vsel %vm125_vm2, %v121_v8, 0.0  ;;  %v133_v10 = vmul.f32 %v121_v8, %v121_v8 }
  0xe4   :  { %v127_v11 = vrot.slane %v126_v9, 4  ;;  %v398_v12 = vpop.f32.mrf.mxu0 }
  0xe5   :  { %v134_v13 = vsel %vm125_vm2, %v133_v10, 0.0  ;;  %v274_v12 = vsub.s32 3, %v154_v31 }
  0xe6   :  { %v128_v14 = vadd.f32 %v127_v11, %v126_v9  ;;  %v135_v15 = vrot.slane %v134_v13, 4 }
  0xe8   :  { %v129_v16 = vrot.slane %v128_v14, 2  ;;  %v136_v17 = vadd.f32 %v135_v15, %v134_v13 }
  0xea   :  { %v130_v18 = vadd.f32 %v129_v16, %v128_v14  ;;  %v137_v19 = vrot.slane %v136_v17, 2 }
  0xec   :  { %v131_v20 = vrot.slane %v130_v18, 1  ;;  %v138_v21 = vadd.f32 %v137_v19, %v136_v17  ;;  %v283_v17 = vsub.s32 4, %v154_v31 }
  0xee   :  { %v132_v22 = vadd.f32 %v131_v20, %v130_v18  ;;  %v139_v23 = vrot.slane %v138_v21, 1  ;;  %v284_v18 = vrot.slane %v48_v32, %v283_v17 }
  0xf0   :  { %v140_v24 = vadd.f32 %v139_v23, %v138_v21  ;;  %v141_v25 = vmul.f32 0.125, %v132_v22 }
  0xf2   :  { %v142_v26 = vmul.f32 0.125, %v140_v24  ;;  %v143_v27 = vmul.f32 %v141_v25, %v141_v25 }
  0xf4   :  { %v144_v28 = vsub.f32 %v142_v26, %v143_v27 }
  0xf6   :  { %v145_v29 = vadd.f32 1e-05, %v144_v28 }
  0xf8   :  { %428 = vrsqrt.f32 %v145_v29 }
 0x105   :  { %v429_v33 = vpop.eup %428 }
 0x106   :  { %v147_v34 = vmul.f32 %v429_v33, %v48_v32 }
 0x108   :  { %v148_v36 = vmul.f32 %v147_v34, %v141_v25  ;;  %v156_v38 = vrot.slane %v147_v34, %v155_v35 }
 0x10a   :  { %v150_v37 = vrot.slane %v148_v36, 7  ;;  %v157_v41 = vmul.f32 %v156_v38, %v121_v8  ;;  %v269_v8 = vsub.s32 2, %v154_v31 }
 0x10c   :  { %v152_v40 = vsub.f32 %v48_v32, %v150_v37 }
 0x10e   :  { %v161_v42 = vrot.slane %v152_v40, %v160_v39 }
 0x110   :  { %v162_v43 = vadd.f32 %v161_v42, %v157_v41 }
 0x112   :  { %408 = vmatmul.mubr.msk.f32.vlgmr.msra.gmra.mxu1 %vm125_vm2, %v162_v43 }
 0x1d2   :  { %v236_v48 = vpop.f32.mrf.mxu1 }
 0x1d3   :  { %v240_v49 = vsel %vm125_vm2, %v236_v48, 0.0  ;;  %v247_v50 = vmul.f32 %v236_v48, %v236_v48 }
 0x1d4   :  { %v241_v51 = vrot.slane %v240_v49, 4  ;;  %v409_v52 = vpop.f32.mrf.mxu1 }
 0x1d5   :  { %v248_v53 = vsel %vm125_vm2, %v247_v50, 0.0 }
 0x1d6   :  { %v242_v54 = vadd.f32 %v241_v51, %v240_v49  ;;  %v249_v55 = vrot.slane %v248_v53, 4 }
 0x1d8   :  { %v243_v56 = vrot.slane %v242_v54, 2  ;;  %v250_v57 = vadd.f32 %v249_v55, %v248_v53 }
 0x1da   :  { %v244_v58 = vadd.f32 %v243_v56, %v242_v54  ;;  %v251_v59 = vrot.slane %v250_v57, 2 }
 0x1dc   :  { %v245_v60 = vrot.slane %v244_v58, 1  ;;  %v252_v61 = vadd.f32 %v251_v59, %v250_v57 }
 0x1de   :  { %v246_v62 = vadd.f32 %v245_v60, %v244_v58  ;;  %v253_v63 = vrot.slane %v252_v61, 1 }
 0x1e0   :  { %v254_v0 = vadd.f32 %v253_v63, %v252_v61  ;;  %v255_v1 = vmul.f32 0.125, %v246_v62 }
 0x1e2   :  { %v256_v2 = vmul.f32 0.125, %v254_v0  ;;  %v257_v3 = vmul.f32 %v255_v1, %v255_v1 }
 0x1e4   :  { %v258_v4 = vsub.f32 %v256_v2, %v257_v3 }
 0x1e6   :  { %v259_v5 = vadd.f32 1e-05, %v258_v4 }
 0x1e8   :  { %430 = vrsqrt.f32 %v259_v5 }
 0x1f5   :  { %v431_v6 = vpop.eup %430 }
 0x1f6   :  { %v261_v7 = vmul.f32 %v431_v6, %v48_v32 }
 0x1f8   :  { %v262_v9 = vmul.f32 %v261_v7, %v255_v1  ;;  %v270_v11 = vrot.slane %v261_v7, %v269_v8 }
 0x1fa   :  { %v264_v10 = vrot.slane %v262_v9, 7  ;;  %v271_v14 = vmul.f32 %v270_v11, %v236_v48 }
 0x1fc   :  { %v266_v13 = vsub.f32 %v48_v32, %v264_v10 }
 0x1fe   :  { %v275_v15 = vrot.slane %v266_v13, %v274_v12 }
 0x200   :  { %v276_v16 = vadd.f32 %v275_v15, %v271_v14 }
 0x202   :  { %419 = vmatmul.mubr.msk.f32.vlgmr.msra.gmra.mxu0 %vm125_vm2, %v276_v16 }
 0x2c2   :  { %v354_v19 = vpop.f32.mrf.mxu0 }
 0x2c3   :  { %v355_v20 = vadd.f32 %v354_v19, %v284_v18 }
 0x2c4   :  { %v420_v21 = vpop.f32.mrf.mxu0 }
 0x2c5   :  { %359 = vst.msk [vmem:[#allocation7] sm:$0xff] %vm358_vm3, %v355_v20 }
 0x2c6   :  { %483 = shalt.err (!%p480_p0)
}
 0x2c7   :  { %369 = dma.vmem_to_hbm [thread:$0]  %s367_s19, 128, %s595_s5, [#allocation4]  }
 0x2c8   :  { %496 = dma.done.wait [#allocation4], 128  }
 0x2c9   :  { %497 = vsyncadd [#allocation4], 4294967168 }
 0x2ca   :  { %373 = vsyncpa [#allocation3], 1 }
 0x2cb   :  { %374 = vsyncpa [#allocation6], 1 }
 0x2cc   :  { %375 = vsyncpa [#allocation4], 1 }

</bundles_post_ra>
